<compile_context>
chip_gen: v7x
topology: tpu7x:2x2x1
jax: 0.10.0
libtpu: 0.0.40
codegen_flags: <defaults>
</compile_context>

<pallas_src>
import math

import jax
import jax.numpy as jnp
from jax.experimental import pallas as pl
from jax.experimental.pallas import tpu as pltpu

EPS = 1e-5  # nn.LayerNorm default


# ----------------------------- in-kernel helpers -----------------------------
def _erf(x):
    # Abramowitz & Stegun 7.1.26 rational approximation of erf.
    a1, a2, a3, a4, a5 = 0.254829592, -0.284496736, 1.421413741, -1.453152027, 1.061405429
    p = 0.3275911
    ax = jnp.abs(x)
    t = 1.0 / (1.0 + p * ax)
    poly = ((((a5 * t + a4) * t + a3) * t + a2) * t + a1) * t
    res = 1.0 - poly * jnp.exp(-ax * ax)
    return jnp.where(x >= 0, res, -res)


def _gelu_exact(x):
    return 0.5 * x * (1.0 + _erf(x * (1.0 / math.sqrt(2.0))))


def _layernorm(x, w, b):
    mu = jnp.mean(x, axis=-1, keepdims=True)
    var = jnp.mean(jnp.square(x - mu), axis=-1, keepdims=True)
    return (x - mu) * jax.lax.rsqrt(var + EPS) * w + b


# ------------------------------ small utilities -------------------------------
def _vmem_limit_bytes(estimate_bytes):
    """Scoped-VMEM budget: at least the defaults, at most physical minus margin."""
    try:
        cap = int(pltpu.get_tpu_info().vmem_capacity_bytes)
    except Exception:
        cap = 64 * 1024 * 1024  # conservative (v7x physical)
    want = max(32 * 1024 * 1024, int(estimate_bytes) * 3 // 2)
    return int(min(want, cap - 4 * 1024 * 1024))


def _weight_spec(shape):
    """Constant-index weight BlockSpec; single-buffered (no point double-buffering)."""
    idx = lambda *_: (0, 0)
    try:
        return pl.BlockSpec(shape, idx, pipeline_mode=pl.Buffered(1))
    except TypeError:  # older jax without pipeline_mode kwarg
        return pl.BlockSpec(shape, idx)


# ----------------------------- MixerBlock kernel ------------------------------
# TODO(synk): for v7x (64 MiB VMEM) tile the FFN hidden dim H (chunked ff_w1/ff_w2
#             with a (T, D) f32 accumulator); the monolithic block kept here is the
#             recommended layout for v5e/v6e (128 MiB VMEM).
def mixer_block_kernel(x_ref, seq_w_ref, seq_b_ref, conv_w_ref, conv_b_ref,
                       outp_w_ref, outp_b_ref, pat_w_ref, pat_b_ref,
                       ff_w1_ref, ff_b1_ref, ff_w2_ref, ff_b2_ref, y_ref):
    x = x_ref[...]                                    # (T, D) f32

    # --- seq LayerNorm (f32) ---
    xn = _layernorm(x, seq_w_ref[...], seq_b_ref[...])

    # --- MixerHead: causal token-mixing matmul; conv weight is already
    #     tril(softmax(tril(W))) (precomputed in the wrapper) and bf16. ---
    conv_out = jnp.dot(conv_w_ref[...], xn.astype(jnp.bfloat16),
                       preferred_element_type=jnp.float32) + conv_b_ref[...]

    # Both heads use the last conv (reference index bug), so the two halves of
    # the out-projection are pre-summed -> one (D, D) matmul instead of two.
    mixed = jnp.dot(conv_out.astype(jnp.bfloat16), outp_w_ref[...],
                    preferred_element_type=jnp.float32) + outp_b_ref[...]
    x1 = mixed + x                                    # residual 1

    # --- patch LayerNorm + FeedForward (Linear -> GELU -> Linear) ---
    x1n = _layernorm(x1, pat_w_ref[...], pat_b_ref[...])
    h1 = jnp.dot(x1n.astype(jnp.bfloat16), ff_w1_ref[...],
                 preferred_element_type=jnp.float32) + ff_b1_ref[...]
    h1 = _gelu_exact(h1)
    h2 = jnp.dot(h1.astype(jnp.bfloat16), ff_w2_ref[...],
                 preferred_element_type=jnp.float32) + ff_b2_ref[...]
    y_ref[...] = (h2 + x1).astype(y_ref.dtype)        # residual 2


def mixer_block(x, p):
    B, T, D = x.shape
    H = p["ff_w1"].shape[1]

    in_specs = [
        pl.BlockSpec((None, T, D), lambda b: (b, 0, 0)),   # x (per-batch)
        _weight_spec((1, D)), _weight_spec((1, D)),        # seq LN w, b (f32)
        _weight_spec((T, T)), _weight_spec((T, 1)),        # conv w_eff (bf16), bias (f32)
        _weight_spec((D, D)), _weight_spec((1, D)),        # summed out_proj W^T (bf16), b
        _weight_spec((1, D)), _weight_spec((1, D)),        # patch LN w, b (f32)
        _weight_spec((D, H)), _weight_spec((1, H)),        # ff1 W^T (bf16), b
        _weight_spec((H, D)), _weight_spec((1, D)),        # ff2 W^T (bf16), b
    ]

    est = int(
        2 * (2 * T * D * 4)                    # x in + y out, double-buffered f32
        + (T * T + D * D + 2 * D * H) * 2      # bf16 weights, single-buffered
        + (T * (6 * D + 2 * H) + T * T) * 4    # f32 live intermediates headroom
    )

    return pl.pallas_call(
        mixer_block_kernel,
        out_shape=jax.ShapeDtypeStruct((B, T, D), jnp.float32),
        grid_spec=pltpu.PrefetchScalarGridSpec(
            num_scalar_prefetch=0,
            grid=(B,),
            in_specs=in_specs,
            out_specs=pl.BlockSpec((None, T, D), lambda b: (b, 0, 0)),
        ),
        compiler_params=pltpu.CompilerParams(
            dimension_semantics=("parallel",),
            vmem_limit_bytes=_vmem_limit_bytes(est)),
    )(x, p["seq_w"], p["seq_b"], p["conv_w"], p["conv_b"],
      p["outp_w"], p["outp_b"], p["pat_w"], p["pat_b"],
      p["ff_w1"], p["ff_b1"], p["ff_w2"], p["ff_b2"])


# ------------------------ lm_head + cross-entropy kernel ----------------------
def lm_head_kernel(x_ref, w_ref, lab_ref, out_ref, nll_ref, m_sc, l_sc, p_sc):
    vi = pl.program_id(1)
    nv = pl.num_programs(1)
    tv = out_ref.shape[0]                          # vocab tile width

    @pl.when(vi == 0)
    def _():
        m_sc[...] = jnp.full_like(m_sc, -jnp.inf)
        l_sc[...] = jnp.zeros_like(l_sc)
        p_sc[...] = jnp.zeros_like(p_sc)

    x = x_ref[...].astype(jnp.bfloat16)            # (T, D)
    logits = jnp.dot(x, w_ref[...], preferred_element_type=jnp.float32)  # (T, tv)

    # Write this vocab tile already transposed ('b t e -> b e t' done in-kernel).
    out_ref[...] = jnp.transpose(logits).astype(out_ref.dtype)

    # Online logsumexp across vocab tiles (all T rows; padded row masked outside).
    m_prev = m_sc[...]
    m_new = jnp.maximum(m_prev, jnp.max(logits, axis=-1, keepdims=True))
    l_sc[...] = (l_sc[...] * jnp.exp(m_prev - m_new)
                 + jnp.sum(jnp.exp(logits - m_new), axis=-1, keepdims=True))
    m_sc[...] = m_new

    # Pick the label logit without a materialized one-hot.
    cols = jax.lax.broadcasted_iota(jnp.int32, logits.shape, 1) + vi * tv
    hit = cols == lab_ref[...]                     # (T, tv) vs (T, 1)
    p_sc[...] += jnp.sum(jnp.where(hit, logits, 0.0), axis=-1, keepdims=True)

    @pl.when(vi == nv - 1)
    def _():
        lse = m_sc[...] + jnp.log(l_sc[...])
        nll_ref[...] = (lse - p_sc[...]).astype(nll_ref.dtype)


def _pick_vocab_tile(V):
    if V % 128 == 0:
        for cand in (2048, 1024, 512, 256, 128):
            if V % cand == 0:
                return cand
    return V  # small / non-128-multiple vocab: single full tile


def lm_head_and_loss(x, lm_wT_bf16, labels_padded):
    """x: (B, T, D) f32; lm_wT_bf16: (D, V) bf16; labels_padded: (B, T, 1) int32.
    Returns (output (B, V, T) f32, nll (B, T, 1) f32)."""
    B, T, D = x.shape
    V = lm_wT_bf16.shape[1]
    tv = _pick_vocab_tile(V)
    nv = V // tv

    est = int(2 * T * D * 4 + 2 * D * tv * 2 + 2 * tv * T * 4
              + 4 * T * tv * 4 + 16 * T * 4)

    output, nll = pl.pallas_call(
        lm_head_kernel,
        out_shape=(jax.ShapeDtypeStruct((B, V, T), jnp.float32),
                   jax.ShapeDtypeStruct((B, T, 1), jnp.float32)),
        grid_spec=pltpu.PrefetchScalarGridSpec(
            num_scalar_prefetch=0,
            grid=(B, nv),
            in_specs=[
                pl.BlockSpec((None, T, D), lambda b, v: (b, 0, 0)),   # activations
                pl.BlockSpec((D, tv), lambda b, v: (0, v)),           # lm_head W^T tile
                pl.BlockSpec((None, T, 1), lambda b, v: (b, 0, 0)),   # shifted labels
            ],
            out_specs=[
                pl.BlockSpec((None, tv, T), lambda b, v: (b, v, 0)),  # transposed logits
                pl.BlockSpec((None, T, 1), lambda b, v: (b, 0, 0)),   # per-position nll
            ],
            scratch_shapes=[pltpu.VMEM((T, 1), jnp.float32)] * 3,     # m, l, picked
        ),
        compiler_params=pltpu.CompilerParams(
            dimension_semantics=("parallel", "arbitrary"),
            vmem_limit_bytes=_vmem_limit_bytes(est)),
    )(x, lm_wT_bf16, labels_padded)
    return output, nll


# -------------------------------- full forward --------------------------------
def language_mixer_forward(params, input_ids, labels):
    B, P, T = input_ids.shape
    x = params["wte"][input_ids]              # embedding gather (glue)
    x = x.reshape(B * P, T, x.shape[-1])      # 'b p t f -> (b p) t f'
    for bp in params["blocks"]:
        x = mixer_block(x, bp)

    # lm_head + CE loss (label/logit shift assumes P == 1, as in the reference).
    lab = labels.reshape(B, P * T).astype(jnp.int32)   # 'b p t -> b (p t)'
    S = lab.shape[1]
    shift_labels = lab[:, 1:]                          # (B, S-1)
    lab_pad = jnp.concatenate(
        [shift_labels, jnp.zeros((B, 1), jnp.int32)], axis=1)[..., None]   # (B, S, 1)

    output, nll = lm_head_and_loss(x, params["lm_wT"], lab_pad)

    # CrossEntropyLoss(mean): drop the padded last position, honor ignore_index=-100.
    pos_valid = (jnp.arange(S) < S - 1)[None, :]
    lbl_valid = jnp.concatenate([shift_labels != -100,
                                 jnp.zeros((B, 1), dtype=bool)], axis=1)
    valid = (pos_valid & lbl_valid).astype(jnp.float32)[..., None]          # (B, S, 1)
    loss = jnp.sum(nll * valid) / jnp.maximum(jnp.sum(valid), 1.0)
    return loss, output


# --------------------------------- parameters ---------------------------------
def init_params(key, n_vocab, dim, length, depth, expansion=4, n_heads=2):
    hidden = dim * expansion

    def w(k, shape, scale=0.02):
        return (scale * jax.random.normal(k, shape)).astype(jnp.float32)

    keys = jax.random.split(key, depth + 2)
    blocks = []
    for d in range(depth):
        k = jax.random.split(keys[d], 8)
        blocks.append(dict(
            seq_w=jnp.ones((1, dim), jnp.float32),
            seq_b=jnp.zeros((1, dim), jnp.float32),
            conv_w=w(k[0], (length, length)),           # Conv1d(length,length,1).weight squeezed
            conv_b=w(k[1], (length, 1)),
            outp_w=w(k[2], (n_heads * dim, dim)),       # Linear(2*dim, dim).weight^T
            outp_b=w(k[3], (1, dim)),
            pat_w=jnp.ones((1, dim), jnp.float32),
            pat_b=jnp.zeros((1, dim), jnp.float32),
            ff_w1=w(k[4], (dim, hidden)),               # Linear(dim, 4*dim).weight^T
            ff_b1=w(k[5], (1, hidden)),
            ff_w2=w(k[6], (hidden, dim)),               # Linear(4*dim, dim).weight^T
            ff_b2=w(k[7], (1, dim)),
        ))
    wte = w(keys[depth], (n_vocab, dim), scale=1.0)     # nn.Embedding(n_vocab, dim)
    lm_wT = w(keys[depth + 1], (dim, n_vocab))          # lm_head.weight^T (no bias)
    return dict(wte=wte, blocks=blocks, lm_wT=lm_wT)


def _effective_conv_weight(conv_w):
    """tril(softmax(tril(W), axis=f)) — batch-invariant, precomputed once (XLA)."""
    T = conv_w.shape[0]
    row = jax.lax.broadcasted_iota(jnp.int32, (T, T), 0)
    col = jax.lax.broadcasted_iota(jnp.int32, (T, T), 1)
    lower = row >= col
    w = jnp.where(lower, conv_w, 0.0)
    w = jax.nn.softmax(w, axis=0)        # softmax over the f axis (dim=-2)
    return jnp.where(lower, w, 0.0)


def prepare_params(params):
    """One-time kernel-ready weight prep: conv softmax hoist, out-proj pre-sum, bf16 cast."""
    blocks = []
    for p in params["blocks"]:
        D = p["outp_b"].shape[-1]
        blocks.append(dict(
            seq_w=p["seq_w"], seq_b=p["seq_b"],
            conv_w=_effective_conv_weight(p["conv_w"]).astype(jnp.bfloat16),
            conv_b=p["conv_b"],
            outp_w=(p["outp_w"][:D] + p["outp_w"][D:]).astype(jnp.bfloat16),
            outp_b=p["outp_b"],
            pat_w=p["pat_w"], pat_b=p["pat_b"],
            ff_w1=p["ff_w1"].astype(jnp.bfloat16), ff_b1=p["ff_b1"],
            ff_w2=p["ff_w2"].astype(jnp.bfloat16), ff_b2=p["ff_b2"],
        ))
    return dict(wte=params["wte"], blocks=blocks,
                lm_wT=params["lm_wT"].astype(jnp.bfloat16))


if __name__ == "__main__":
    # Small shapes consistent with the module: batch=2, p=1, seq=8, dim=32,
    # vocab=64, depth=2.  (Reference uses dim=1024, length=512, vocab=len(tokenizer);
    # the tokenizer/file load is replaced by a fixed synthetic n_vocab.)
    B, P, T, D, V, DEPTH = 2, 1, 8, 32, 64, 2
    key = jax.random.PRNGKey(0)
    k_ids, k_lab, k_par = jax.random.split(key, 3)
    input_ids = jax.random.randint(k_ids, (B, P, T), 0, V)
    labels = jax.random.randint(k_lab, (B, P, T), 0, V)

    params = prepare_params(init_params(k_par, V, D, T, DEPTH))

    loss, output = language_mixer_forward(params, input_ids, labels)
    jax.block_until_ready((loss, output))
    assert output.shape == (B * P, V, T)
    assert loss.shape == ()
    print("KERNEL_OK")
</pallas_src>

<mosaic_0001>
module attributes {stable_mosaic.version = 11 : i64} {
  func.func @mixer_block_kernel(%arg0: i32, %arg1: memref<1x8x32xf32, #tpu.memory_space<vmem>>, %arg2: memref<1x32xf32, #tpu.memory_space<vmem>>, %arg3: memref<1x32xf32, #tpu.memory_space<vmem>>, %arg4: memref<8x8xbf16, #tpu.memory_space<vmem>>, %arg5: memref<8x1xf32, #tpu.memory_space<vmem>>, %arg6: memref<32x32xbf16, #tpu.memory_space<vmem>>, %arg7: memref<1x32xf32, #tpu.memory_space<vmem>>, %arg8: memref<1x32xf32, #tpu.memory_space<vmem>>, %arg9: memref<1x32xf32, #tpu.memory_space<vmem>>, %arg10: memref<32x128xbf16, #tpu.memory_space<vmem>>, %arg11: memref<1x128xf32, #tpu.memory_space<vmem>>, %arg12: memref<128x32xbf16, #tpu.memory_space<vmem>>, %arg13: memref<1x32xf32, #tpu.memory_space<vmem>>, %arg14: memref<1x8x32xf32, #tpu.memory_space<vmem>>) attributes {dimension_semantics = [#tpu.dimension_semantics<parallel>], iteration_bounds = array<i64: 2>, scalar_prefetch = 0 : i64, scratch_operands = 0 : i64, tpu.core_type = #tpu.core_type<tc>, window_params = [{transform_indices = @transform_0, window_bounds = array<i64: 1, 8, 32>}, {pipeline_mode = #tpu.pipeline_mode<synchronous>, transform_indices = @transform_1, window_bounds = array<i64: 1, 32>}, {pipeline_mode = #tpu.pipeline_mode<synchronous>, transform_indices = @transform_2, window_bounds = array<i64: 1, 32>}, {pipeline_mode = #tpu.pipeline_mode<synchronous>, transform_indices = @transform_3, window_bounds = array<i64: 8, 8>}, {pipeline_mode = #tpu.pipeline_mode<synchronous>, transform_indices = @transform_4, window_bounds = array<i64: 8, 1>}, {pipeline_mode = #tpu.pipeline_mode<synchronous>, transform_indices = @transform_5, window_bounds = array<i64: 32, 32>}, {pipeline_mode = #tpu.pipeline_mode<synchronous>, transform_indices = @transform_6, window_bounds = array<i64: 1, 32>}, {pipeline_mode = #tpu.pipeline_mode<synchronous>, transform_indices = @transform_7, window_bounds = array<i64: 1, 32>}, {pipeline_mode = #tpu.pipeline_mode<synchronous>, transform_indices = @transform_8, window_bounds = array<i64: 1, 32>}, {pipeline_mode = #tpu.pipeline_mode<synchronous>, transform_indices = @transform_9, window_bounds = array<i64: 32, 128>}, {pipeline_mode = #tpu.pipeline_mode<synchronous>, transform_indices = @transform_10, window_bounds = array<i64: 1, 128>}, {pipeline_mode = #tpu.pipeline_mode<synchronous>, transform_indices = @transform_11, window_bounds = array<i64: 128, 32>}, {pipeline_mode = #tpu.pipeline_mode<synchronous>, transform_indices = @transform_12, window_bounds = array<i64: 1, 32>}, {transform_indices = @transform_13, window_bounds = array<i64: 1, 8, 32>}]} {
    %c0 = arith.constant 0 : index
    %c0_0 = arith.constant 0 : index
    %c0_1 = arith.constant 0 : index
    %0 = vector.load %arg1[%c0, %c0_0, %c0_1] : memref<1x8x32xf32, #tpu.memory_space<vmem>>, vector<1x8x32xf32>
    %1 = vector.shape_cast %0 : vector<1x8x32xf32> to vector<8x32xf32>
    %c0_2 = arith.constant 0 : index
    %c0_3 = arith.constant 0 : index
    %2 = vector.load %arg2[%c0_2, %c0_3] : memref<1x32xf32, #tpu.memory_space<vmem>>, vector<1x32xf32>
    %c0_4 = arith.constant 0 : index
    %c0_5 = arith.constant 0 : index
    %3 = vector.load %arg3[%c0_4, %c0_5] : memref<1x32xf32, #tpu.memory_space<vmem>>, vector<1x32xf32>
    %cst = arith.constant dense<0.000000e+00> : vector<8xf32>
    %4 = vector.multi_reduction <add>, %1, %cst [1] : vector<8x32xf32> to vector<8xf32>
    %5 = vector.shape_cast %4 : vector<8xf32> to vector<8x1xf32>
    %cst_6 = arith.constant 3.200000e+01 : f32
    %6 = vector.broadcast %cst_6 : f32 to vector<8x1xf32>
    %7 = arith.divf %5, %6 : vector<8x1xf32>
    %8 = vector.broadcast %7 : vector<8x1xf32> to vector<8x32xf32>
    %9 = arith.subf %1, %8 : vector<8x32xf32>
    %10 = arith.mulf %9, %9 : vector<8x32xf32>
    %cst_7 = arith.constant dense<0.000000e+00> : vector<8xf32>
    %11 = vector.multi_reduction <add>, %10, %cst_7 [1] : vector<8x32xf32> to vector<8xf32>
    %12 = vector.shape_cast %11 : vector<8xf32> to vector<8x1xf32>
    %cst_8 = arith.constant 3.200000e+01 : f32
    %13 = vector.broadcast %cst_8 : f32 to vector<8x1xf32>
    %14 = arith.divf %12, %13 : vector<8x1xf32>
    %15 = vector.broadcast %7 : vector<8x1xf32> to vector<8x32xf32>
    %16 = arith.subf %1, %15 : vector<8x32xf32>
    %cst_9 = arith.constant 9.99999974E-6 : f32
    %17 = vector.broadcast %cst_9 : f32 to vector<8x1xf32>
    %18 = arith.addf %14, %17 : vector<8x1xf32>
    %19 = math.rsqrt %18 : vector<8x1xf32>
    %20 = vector.broadcast %19 : vector<8x1xf32> to vector<8x32xf32>
    %21 = arith.mulf %16, %20 : vector<8x32xf32>
    %22 = vector.broadcast %2 : vector<1x32xf32> to vector<8x32xf32>
    %23 = arith.mulf %21, %22 : vector<8x32xf32>
    %24 = vector.broadcast %3 : vector<1x32xf32> to vector<8x32xf32>
    %25 = arith.addf %23, %24 : vector<8x32xf32>
    %c0_10 = arith.constant 0 : index
    %c0_11 = arith.constant 0 : index
    %26 = vector.load %arg4[%c0_10, %c0_11] : memref<8x8xbf16, #tpu.memory_space<vmem>>, vector<8x8xbf16>
    %27 = arith.truncf %25 : vector<8x32xf32> to vector<8x32xbf16>
    %cst_12 = arith.constant dense<0.000000e+00> : vector<8x32xf32>
    %28 = tpu.matmul %26, %27, %cst_12 {dimension_numbers = #tpu.dot_dimension_numbers<[1], [0], [0], [1], [0, 0, 1, 1], [], []>} : vector<8x8xbf16>, vector<8x32xbf16>, vector<8x32xf32> -> vector<8x32xf32>
    %c0_13 = arith.constant 0 : index
    %c0_14 = arith.constant 0 : index
    %29 = vector.load %arg5[%c0_13, %c0_14] : memref<8x1xf32, #tpu.memory_space<vmem>>, vector<8x1xf32>
    %30 = vector.broadcast %29 : vector<8x1xf32> to vector<8x32xf32>
    %31 = arith.addf %28, %30 : vector<8x32xf32>
    %32 = arith.truncf %31 : vector<8x32xf32> to vector<8x32xbf16>
    %c0_15 = arith.constant 0 : index
    %c0_16 = arith.constant 0 : index
    %33 = vector.load %arg6[%c0_15, %c0_16] : memref<32x32xbf16, #tpu.memory_space<vmem>>, vector<32x32xbf16>
    %cst_17 = arith.constant dense<0.000000e+00> : vector<8x32xf32>
    %34 = tpu.matmul %32, %33, %cst_17 {dimension_numbers = #tpu.dot_dimension_numbers<[1], [0], [0], [1], [0, 0, 1, 1], [], []>} : vector<8x32xbf16>, vector<32x32xbf16>, vector<8x32xf32> -> vector<8x32xf32>
    %c0_18 = arith.constant 0 : index
    %c0_19 = arith.constant 0 : index
    %35 = vector.load %arg7[%c0_18, %c0_19] : memref<1x32xf32, #tpu.memory_space<vmem>>, vector<1x32xf32>
    %36 = vector.broadcast %35 : vector<1x32xf32> to vector<8x32xf32>
    %37 = arith.addf %34, %36 : vector<8x32xf32>
    %38 = arith.addf %37, %1 : vector<8x32xf32>
    %c0_20 = arith.constant 0 : index
    %c0_21 = arith.constant 0 : index
    %39 = vector.load %arg8[%c0_20, %c0_21] : memref<1x32xf32, #tpu.memory_space<vmem>>, vector<1x32xf32>
    %c0_22 = arith.constant 0 : index
    %c0_23 = arith.constant 0 : index
    %40 = vector.load %arg9[%c0_22, %c0_23] : memref<1x32xf32, #tpu.memory_space<vmem>>, vector<1x32xf32>
    %cst_24 = arith.constant dense<0.000000e+00> : vector<8xf32>
    %41 = vector.multi_reduction <add>, %38, %cst_24 [1] : vector<8x32xf32> to vector<8xf32>
    %42 = vector.shape_cast %41 : vector<8xf32> to vector<8x1xf32>
    %cst_25 = arith.constant 3.200000e+01 : f32
    %43 = vector.broadcast %cst_25 : f32 to vector<8x1xf32>
    %44 = arith.divf %42, %43 : vector<8x1xf32>
    %45 = vector.broadcast %44 : vector<8x1xf32> to vector<8x32xf32>
    %46 = arith.subf %38, %45 : vector<8x32xf32>
    %47 = arith.mulf %46, %46 : vector<8x32xf32>
    %cst_26 = arith.constant dense<0.000000e+00> : vector<8xf32>
    %48 = vector.multi_reduction <add>, %47, %cst_26 [1] : vector<8x32xf32> to vector<8xf32>
    %49 = vector.shape_cast %48 : vector<8xf32> to vector<8x1xf32>
    %cst_27 = arith.constant 3.200000e+01 : f32
    %50 = vector.broadcast %cst_27 : f32 to vector<8x1xf32>
    %51 = arith.divf %49, %50 : vector<8x1xf32>
    %52 = vector.broadcast %44 : vector<8x1xf32> to vector<8x32xf32>
    %53 = arith.subf %38, %52 : vector<8x32xf32>
    %cst_28 = arith.constant 9.99999974E-6 : f32
    %54 = vector.broadcast %cst_28 : f32 to vector<8x1xf32>
    %55 = arith.addf %51, %54 : vector<8x1xf32>
    %56 = math.rsqrt %55 : vector<8x1xf32>
    %57 = vector.broadcast %56 : vector<8x1xf32> to vector<8x32xf32>
    %58 = arith.mulf %53, %57 : vector<8x32xf32>
    %59 = vector.broadcast %39 : vector<1x32xf32> to vector<8x32xf32>
    %60 = arith.mulf %58, %59 : vector<8x32xf32>
    %61 = vector.broadcast %40 : vector<1x32xf32> to vector<8x32xf32>
    %62 = arith.addf %60, %61 : vector<8x32xf32>
    %63 = arith.truncf %62 : vector<8x32xf32> to vector<8x32xbf16>
    %c0_29 = arith.constant 0 : index
    %c0_30 = arith.constant 0 : index
    %64 = vector.load %arg10[%c0_29, %c0_30] : memref<32x128xbf16, #tpu.memory_space<vmem>>, vector<32x128xbf16>
    %cst_31 = arith.constant dense<0.000000e+00> : vector<8x128xf32>
    %65 = tpu.matmul %63, %64, %cst_31 {dimension_numbers = #tpu.dot_dimension_numbers<[1], [0], [0], [1], [0, 0, 1, 1], [], []>} : vector<8x32xbf16>, vector<32x128xbf16>, vector<8x128xf32> -> vector<8x128xf32>
    %c0_32 = arith.constant 0 : index
    %c0_33 = arith.constant 0 : index
    %66 = vector.load %arg11[%c0_32, %c0_33] : memref<1x128xf32, #tpu.memory_space<vmem>>, vector<1x128xf32>
    %67 = vector.broadcast %66 : vector<1x128xf32> to vector<8x128xf32>
    %68 = arith.addf %65, %67 : vector<8x128xf32>
    %cst_34 = arith.constant 5.000000e-01 : f32
    %69 = vector.broadcast %cst_34 : f32 to vector<8x128xf32>
    %70 = arith.mulf %69, %68 : vector<8x128xf32>
    %cst_35 = arith.constant 0.707106769 : f32
    %71 = vector.broadcast %cst_35 : f32 to vector<8x128xf32>
    %72 = arith.mulf %68, %71 : vector<8x128xf32>
    %73 = math.absf %72 : vector<8x128xf32>
    %cst_36 = arith.constant 0.327591091 : f32
    %74 = vector.broadcast %cst_36 : f32 to vector<8x128xf32>
    %75 = arith.mulf %74, %73 : vector<8x128xf32>
    %cst_37 = arith.constant 1.000000e+00 : f32
    %76 = vector.broadcast %cst_37 : f32 to vector<8x128xf32>
    %77 = arith.addf %76, %75 : vector<8x128xf32>
    %cst_38 = arith.constant 1.000000e+00 : f32
    %78 = vector.broadcast %cst_38 : f32 to vector<8x128xf32>
    %79 = arith.divf %78, %77 : vector<8x128xf32>
    %cst_39 = arith.constant 1.06140542 : f32
    %80 = vector.broadcast %cst_39 : f32 to vector<8x128xf32>
    %81 = arith.mulf %80, %79 : vector<8x128xf32>
    %cst_40 = arith.constant -1.45315206 : f32
    %82 = vector.broadcast %cst_40 : f32 to vector<8x128xf32>
    %83 = arith.addf %81, %82 : vector<8x128xf32>
    %84 = arith.mulf %83, %79 : vector<8x128xf32>
    %cst_41 = arith.constant 1.42141378 : f32
    %85 = vector.broadcast %cst_41 : f32 to vector<8x128xf32>
    %86 = arith.addf %84, %85 : vector<8x128xf32>
    %87 = arith.mulf %86, %79 : vector<8x128xf32>
    %cst_42 = arith.constant -0.284496725 : f32
    %88 = vector.broadcast %cst_42 : f32 to vector<8x128xf32>
    %89 = arith.addf %87, %88 : vector<8x128xf32>
    %90 = arith.mulf %89, %79 : vector<8x128xf32>
    %cst_43 = arith.constant 0.254829586 : f32
    %91 = vector.broadcast %cst_43 : f32 to vector<8x128xf32>
    %92 = arith.addf %90, %91 : vector<8x128xf32>
    %93 = arith.mulf %92, %79 : vector<8x128xf32>
    %cst_44 = arith.constant 0.000000e+00 : f32
    %94 = vector.broadcast %cst_44 : f32 to vector<8x128xf32>
    %95 = arith.subf %94, %73 : vector<8x128xf32>
    %96 = arith.mulf %95, %73 : vector<8x128xf32>
    %97 = math.exp %96 : vector<8x128xf32>
    %98 = arith.mulf %93, %97 : vector<8x128xf32>
    %cst_45 = arith.constant 1.000000e+00 : f32
    %99 = vector.broadcast %cst_45 : f32 to vector<8x128xf32>
    %100 = arith.subf %99, %98 : vector<8x128xf32>
    %cst_46 = arith.constant 0.000000e+00 : f32
    %101 = vector.broadcast %cst_46 : f32 to vector<8x128xf32>
    %102 = arith.cmpf oge, %72, %101 : vector<8x128xf32>
    %cst_47 = arith.constant 0.000000e+00 : f32
    %103 = vector.broadcast %cst_47 : f32 to vector<8x128xf32>
    %104 = arith.subf %103, %100 : vector<8x128xf32>
    %105 = arith.select %102, %100, %104 : vector<8x128xi1>, vector<8x128xf32>
    %cst_48 = arith.constant 1.000000e+00 : f32
    %106 = vector.broadcast %cst_48 : f32 to vector<8x128xf32>
    %107 = arith.addf %106, %105 : vector<8x128xf32>
    %108 = arith.mulf %70, %107 : vector<8x128xf32>
    %109 = arith.truncf %108 : vector<8x128xf32> to vector<8x128xbf16>
    %c0_49 = arith.constant 0 : index
    %c0_50 = arith.constant 0 : index
    %110 = vector.load %arg12[%c0_49, %c0_50] : memref<128x32xbf16, #tpu.memory_space<vmem>>, vector<128x32xbf16>
    %cst_51 = arith.constant dense<0.000000e+00> : vector<8x32xf32>
    %111 = tpu.matmul %109, %110, %cst_51 {dimension_numbers = #tpu.dot_dimension_numbers<[1], [0], [0], [1], [0, 0, 1, 1], [], []>} : vector<8x128xbf16>, vector<128x32xbf16>, vector<8x32xf32> -> vector<8x32xf32>
    %c0_52 = arith.constant 0 : index
    %c0_53 = arith.constant 0 : index
    %112 = vector.load %arg13[%c0_52, %c0_53] : memref<1x32xf32, #tpu.memory_space<vmem>>, vector<1x32xf32>
    %113 = vector.broadcast %112 : vector<1x32xf32> to vector<8x32xf32>
    %114 = arith.addf %111, %113 : vector<8x32xf32>
    %115 = arith.addf %114, %38 : vector<8x32xf32>
    %c0_54 = arith.constant 0 : index
    %c0_55 = arith.constant 0 : index
    %c0_56 = arith.constant 0 : index
    %116 = vector.load %arg14[%c0_54, %c0_55, %c0_56] : memref<1x8x32xf32, #tpu.memory_space<vmem>>, vector<1x8x32xf32>
    %117 = vector.shape_cast %116 : vector<1x8x32xf32> to vector<8x32xf32>
    %118 = vector.shape_cast %115 : vector<8x32xf32> to vector<1x8x32xf32>
    tpu.vector_store %arg14[%c0_54, %c0_55, %c0_56], %118 {strides = array<i32>} : memref<1x8x32xf32, #tpu.memory_space<vmem>>, vector<1x8x32xf32>,
    return
  }
  func.func @transform_0(%arg0: i32) -> (i32, i32, i32) {
    %c0_i32 = arith.constant 0 : i32
    %c0_i32_0 = arith.constant 0 : i32
    %c0_i32_1 = arith.constant 0 : i32
    return %arg0, %c0_i32, %c0_i32_0 : i32, i32, i32
  }
  func.func @transform_1(%arg0: i32) -> (i32, i32) {
    %c0_i32 = arith.constant 0 : i32
    %c0_i32_0 = arith.constant 0 : i32
    %c0_i32_1 = arith.constant 0 : i32
    return %c0_i32, %c0_i32_0 : i32, i32
  }
  func.func @transform_2(%arg0: i32) -> (i32, i32) {
    %c0_i32 = arith.constant 0 : i32
    %c0_i32_0 = arith.constant 0 : i32
    %c0_i32_1 = arith.constant 0 : i32
    return %c0_i32, %c0_i32_0 : i32, i32
  }
  func.func @transform_3(%arg0: i32) -> (i32, i32) {
    %c0_i32 = arith.constant 0 : i32
    %c0_i32_0 = arith.constant 0 : i32
    %c0_i32_1 = arith.constant 0 : i32
    return %c0_i32, %c0_i32_0 : i32, i32
  }
  func.func @transform_4(%arg0: i32) -> (i32, i32) {
    %c0_i32 = arith.constant 0 : i32
    %c0_i32_0 = arith.constant 0 : i32
    %c0_i32_1 = arith.constant 0 : i32
    return %c0_i32, %c0_i32_0 : i32, i32
  }
  func.func @transform_5(%arg0: i32) -> (i32, i32) {
    %c0_i32 = arith.constant 0 : i32
    %c0_i32_0 = arith.constant 0 : i32
    %c0_i32_1 = arith.constant 0 : i32
    return %c0_i32, %c0_i32_0 : i32, i32
  }
  func.func @transform_6(%arg0: i32) -> (i32, i32) {
    %c0_i32 = arith.constant 0 : i32
    %c0_i32_0 = arith.constant 0 : i32
    %c0_i32_1 = arith.constant 0 : i32
    return %c0_i32, %c0_i32_0 : i32, i32
  }
  func.func @transform_7(%arg0: i32) -> (i32, i32) {
    %c0_i32 = arith.constant 0 : i32
    %c0_i32_0 = arith.constant 0 : i32
    %c0_i32_1 = arith.constant 0 : i32
    return %c0_i32, %c0_i32_0 : i32, i32
  }
  func.func @transform_8(%arg0: i32) -> (i32, i32) {
    %c0_i32 = arith.constant 0 : i32
    %c0_i32_0 = arith.constant 0 : i32
    %c0_i32_1 = arith.constant 0 : i32
    return %c0_i32, %c0_i32_0 : i32, i32
  }
  func.func @transform_9(%arg0: i32) -> (i32, i32) {
    %c0_i32 = arith.constant 0 : i32
    %c0_i32_0 = arith.constant 0 : i32
    %c0_i32_1 = arith.constant 0 : i32
    return %c0_i32, %c0_i32_0 : i32, i32
  }
  func.func @transform_10(%arg0: i32) -> (i32, i32) {
    %c0_i32 = arith.constant 0 : i32
    %c0_i32_0 = arith.constant 0 : i32
    %c0_i32_1 = arith.constant 0 : i32
    return %c0_i32, %c0_i32_0 : i32, i32
  }
  func.func @transform_11(%arg0: i32) -> (i32, i32) {
    %c0_i32 = arith.constant 0 : i32
    %c0_i32_0 = arith.constant 0 : i32
    %c0_i32_1 = arith.constant 0 : i32
    return %c0_i32, %c0_i32_0 : i32, i32
  }
  func.func @transform_12(%arg0: i32) -> (i32, i32) {
    %c0_i32 = arith.constant 0 : i32
    %c0_i32_0 = arith.constant 0 : i32
    %c0_i32_1 = arith.constant 0 : i32
    return %c0_i32, %c0_i32_0 : i32, i32
  }
  func.func @transform_13(%arg0: i32) -> (i32, i32, i32) {
    %c0_i32 = arith.constant 0 : i32
    %c0_i32_0 = arith.constant 0 : i32
    %c0_i32_1 = arith.constant 0 : i32
    return %arg0, %c0_i32, %c0_i32_0 : i32, i32, i32
  }
}

</mosaic_0001>

<bundles_post_ra>
// kernel: tpu_custom_call.1
= control target key start
LH: loop header
LB: loop body
LE: loop exit
PB: predicated region body
PF: predicated region fallthrough
CT: control target
= control target key end

     0   :  { %s1392_s0 = inlined_call_operand.vmem [shape: f32[2,8,32], index: 0, kind: input, shape index: {}]   ;;  %s1393_s1 = inlined_call_operand.vmem [shape: f32[1,32], index: 1, kind: input, shape index: {}]   ;;  %s1394_s2 = inlined_call_operand.vmem [shape: f32[1,32], index: 2, kind: input, shape index: {}]   ;;  %s1395_s3 = inlined_call_operand.vmem [shape: bf16[8,8], index: 3, kind: input, shape index: {}]   ;;  %s1396_s4 = inlined_call_operand.vmem [shape: f32[8,1], index: 4, kind: input, shape index: {}]   ;;  %s1397_s5 = inlined_call_operand.vmem [shape: bf16[32,32], index: 5, kind: input, shape index: {}]   ;;  %s1398_s6 = inlined_call_operand.vmem [shape: f32[1,32], index: 6, kind: input, shape index: {}]   ;;  %s1399_s7 = inlined_call_operand.vmem [shape: f32[1,32], index: 7, kind: input, shape index: {}]   ;;  %s1400_s8 = inlined_call_operand.vmem [shape: f32[1,32], index: 8, kind: input, shape index: {}]   ;;  %s1401_s9 = inlined_call_operand.vmem [shape: bf16[32,128], index: 9, kind: input, shape index: {}]   ;;  %s1402_s10 = inlined_call_operand.vmem [shape: f32[1,128], index: 10, kind: input, shape index: {}]   ;;  %s1403_s11 = inlined_call_operand.vmem [shape: bf16[128,32], index: 11, kind: input, shape index: {}]   ;;  %s1404_s12 = inlined_call_operand.vmem [shape: f32[1,32], index: 12, kind: input, shape index: {}]   ;;  %s1405_s13 = inlined_call_operand.hbm [shape: f32[2,8,32], index: 13, kind: output, shape index: {}]  }
   0x1   :  { %1406 = sst [smem:[#allocation5_spill]] %s1392_s0 }
   0x2   :  { %1407 = sst [smem:[#allocation6_spill]] %s1393_s1 }
   0x3   :  { %1408 = sst [smem:[#allocation7_spill]] %s1394_s2 }
   0x4   :  { %18 = vsyncpa [#allocation3], 0 }
   0x5   :  { %20 = vsyncpa [#allocation3 + $0x1], 0  ;;  %s1196_s25 = smov 0   ;;  %s1198_s26 = smov 0  }
   0x6   :  { %s1200_s27 = smov 0   ;;  %s1202_s28 = smov 0  }
   0x7 LB: > { %s1217_s29 = sadd.s32 4294967295, %s1120_s28   ;;  %s903_s30 = sadd.s32 4294967294, %s1120_s28   ;;  %s1120_s28 = sphi %s1202_s28, %s1417_s28   ;;  %s1116_s27 = sphi %s1200_s27, %s1416_s27   ;;  %s1112_s26 = sphi %s1198_s26, %s1415_s26   ;;  %s1108_s25 = sphi %s1196_s25, %s1414_s25  }
   0x8   : > { %s1221_s14 = sadd.s32 1, %s1120_s28   ;;  %s311_s15 = sadd.s32 1, %s1116_s27 }
   0x9   : > { %s308_s16 = ssub.s32 %s1120_s28, %s1221_s14  ;;  %p321_p0 = scmp.ne.s32.totalorder %s1116_s27, %s1112_s26 }
   0xa   : > { %p309_p1 = scmp.eq.s32.totalorder %s308_s16, 0  ;;  %p322_p2 = scmp.eq.s32.totalorder %s1217_s29, 1 }
   0xb   : > { %p327_p3 = scmp.ne.s32.totalorder %s1112_s26, %s1108_s25  ;;  %p328_p4 = scmp.eq.s32.totalorder %s903_s30, 1 }
   0xc   : > { %s1232_s17 = scalar_select %p309_p1, %s1116_s27, %s311_s15  }
   0xd   : > { %p1234_p5 = por %p322_p2, %p321_p0  ;;  %p1238_p6 = por %p328_p4, %p327_p3 }
   0xe   : > { %p906_p7 = scmp.ge.s32.totalorder %s1120_s28, 1  ;;  %p389_p8 = scmp.lt.s32.totalorder %s1120_s28, 3 }
  0x10   : > { %p390_p9 = pnand %p906_p7, %p389_p8 }
  0x11   : > { %p432_p10 = scmp.lt.s32.totalorder (!%p390_p9), %s1217_s29, 1  ;;  %vm440_vm0 = vcmask (!%p390_p9), 261120   ;;  %s1411_s0 = sld [smem:[#allocation5_spill]] (!%p390_p9)  ;;  %v1122_v7 = vmov (!%p390_p9), 0.0   ;;  %vm1123_vm1 = vmmov (!%p390_p9), 0   ;;  %v471_v8 = vld [vmem:[%s1396_s4] sm:$0xff] (!%p390_p9) }
  0x12   : > { %393 = sbr.rel (%p390_p9) target bundleno = 1590 (0x636), region = 72  ;;  %952 = vmatprep.subr.bf16.mxu0 (!%p390_p9), %v1122_v7  ;;  %974 = vmatprep.subr.bf16.mxu1 (!%p390_p9), %v1122_v7  ;;  %v1124_v9 = vmov (!%p390_p9), 0   ;;  %s1412_s1 = sld [smem:[#allocation6_spill]] (!%p390_p9)  ;;  %vm481_vm2 = vcmask (!%p390_p9), 1043456   ;;  %v469_v21 = vld [vmem:[%s1395_s3] sm:$0xf] (!%p390_p9) }
  0x13   : > { %954 = vmatprep.mubr.msk.bf16.mxu0 (!%p390_p9), %vm1123_vm1, %v1122_v7  ;;  %990 = vmatprep.mubr.msk.bf16.mxu1 (!%p390_p9), %vm1123_vm1, %v1122_v7  ;;  %s1413_s2 = sld [smem:[#allocation7_spill]] (!%p390_p9)  ;;  %vm477_vm3 = vcmask (!%p390_p9), 64512   ;;  %v1038_v22 = vld [vmem:[%s1397_s5] sm:$0xff] (!%p390_p9)   ;;  %v1039_v23 = vld [vmem:[%s1397_s5 + $0x8] sm:$0xff] (!%p390_p9)   ;;  %v1044_v58 = vld [vmem:[%s1403_s11 + $0x10] sm:$0xff] (!%p390_p9)   ;;  %s429_s30 = sand.u32 (!%p390_p9), 1, %s1112_s26  }
  0x14   : > { %1036 = vset.pattern.permute.xlu1 (!%p390_p9), %v1124_v9  ;;  %1037 = vset.pattern.permute.xlu0 (!%p390_p9), %v1124_v9  ;;  %v912_v31 = vld [vmem:[%s1398_s6] ss:$0 sm:$0xff] (!%p390_p9)  ;;  %v1041_v45 = vld [vmem:[%s1401_s9 + $0x8] sm:$0xff] (!%p390_p9)   ;;  %v1045_v59 = vld [vmem:[%s1403_s11 + $0x18] sm:$0xff] (!%p390_p9)   ;;  %s907_s15 = sshll.u32 (!%p390_p9), %s429_s30, 3  ;;  %s1125_s16 = smov (!%p390_p9), [#allocation2]  }
  0x15   : > { %474 = vperm.xlu1 (!%p390_p9), %1036, %v471_v8   ;;  %v1040_v44 = vld [vmem:[%s1401_s9] sm:$0xff] (!%p390_p9)   ;;  %v1043_v57 = vld [vmem:[%s1403_s11 + $0x8] sm:$0xff] (!%p390_p9)   ;;  %v1048_v62 = vld [vmem:[%s1403_s11 + $0x30] sm:$0xff] (!%p390_p9)   ;;  %s431_s22 = scalar_lea.vmem (!%p390_p9), [#allocation2], %s907_s15 }
  0x16   : > { %v916_v50 = vld [vmem:[%s1399_s7] ss:$0 sm:$0xff] (!%p390_p9)  ;;  %v1047_v61 = vld [vmem:[%s1403_s11 + $0x28] sm:$0xff] (!%p390_p9)   ;;  %v1049_v63 = vld [vmem:[%s1403_s11 + $0x38] sm:$0xff] (!%p390_p9)   ;;  %s844_s23 = sshll.u32 (!%p390_p9), %s431_s22, 4  ;;  %s1351_s23 = int_to_ptr.vmem [resolvable:$true] %s844_s23 }
  0x17   : > { %v917_v52 = vld [vmem:[%s1400_s8] ss:$0 sm:$0xff] (!%p390_p9)  ;;  %s1058_s15 = scalar_lea.vmem (!%p390_p9), %s1351_s23, 128 }
  0x18   : > { %v909_v14 = vld [vmem:[%s1412_s1] ss:$0 sm:$0xff] (!%p390_p9)  ;;  %p1059_p11 = scmp.ne.s32.totalorder (!%p390_p9), %s1351_s23, %s1058_s15 }
  0x19   : > { %s433_s20 = scalar_select %p432_p10, %s1217_s29, 1  ;;  %v910_v16 = vld [vmem:[%s1413_s2] ss:$0 sm:$0xff] }
  0x1a   : > { %v1042_v56 = vld [vmem:[%s1403_s11] sm:$0xff]   ;;  %p1060_p12 = pnand %p1059_p11, %p1234_p5 }
  0x1b   : > { %s908_s21 = sshll.u32 %s433_s20, 3  ;;  %975 = vmatpush3.bf16.msra.mxu1 %v1042_v56  ;;  %v1046_v60 = vld [vmem:[%s1403_s11 + $0x20] sm:$0xff]   ;;  %s1062_s20 = sshll.u32 %s1125_s16, 4  ;;  %s1063_s20 = int_to_ptr.vmem [resolvable:$false] %s1062_s20 }
  0x1c   : > { %s435_s24 = scalar_lea.vmem %s1411_s0, %s908_s21  ;;  %976 = vmatprep.subr.bf16.mxu1 %v1122_v7  ;;  %s932_s21 = sshll.u32 %s1217_s29, 7 }
  0x1d   : > { %v437_v0 = vld [vmem:[%s435_s24] sm:$0xff]  ;;  %s1349_s1 = scalar_lea.hbm %s1405_s13, %s932_s21  ;;  %s831_s29 = scalar_lea.sflag [#allocation3], %s429_s30 }
  0x1e   : > { %v441_v1 = vsel %vm440_vm0, %v437_v0, 0.0  ;;  %p1061_p13 = pneg %p1060_p12  ;;  %s1064_s2 = scalar_lea.vmem %s1063_s20, 256 }
  0x1f   : > { %442 = vadd.xlane.f32.xlu0 %v441_v1  ;;  %977 = vmatpush3.bf16.msra.mxu1 %v1043_v57  ;;  %p1065_p0 = scmp.lt.s32.totalorder %s1351_s23, %s1063_s20  ;;  %p1066_p1 = scmp.lt.s32.totalorder %s1064_s2, %s1058_s15 }
  0x20   : > { %978 = vmatprep.subr.bf16.mxu1 %v1122_v7 }
  0x21   : > { %p1067_p2 = por %p1066_p1, %p1065_p0 }
  0x23   : > { %979 = vmatpush3.bf16.msra.mxu1 %v1044_v58  ;;  %p1068_p3 = pnand %p1067_p2, %p1061_p13 }
  0x24   : > { %980 = vmatprep.subr.bf16.mxu1 %v1122_v7 }
  0x27   : > { %981 = vmatpush3.bf16.msra.mxu1 %v1045_v59 }
  0x28   : > { %982 = vmatprep.subr.bf16.mxu1 %v1122_v7 }
  0x2b   : > { %983 = vmatpush3.bf16.msra.mxu1 %v1046_v60 }
  0x2c   : > { %984 = vmatprep.subr.bf16.mxu1 %v1122_v7 }
  0x2f   : > { %985 = vmatpush3.bf16.msra.mxu1 %v1047_v61 }
  0x30   : > { %986 = vmatprep.subr.bf16.mxu1 %v1122_v7 }
  0x33   : > { %987 = vmatpush3.bf16.msra.mxu1 %v1048_v62 }
  0x34   : > { %988 = vmatprep.subr.bf16.mxu1 %v1122_v7 }
  0x37   : > { %989 = vmatpush3.bf16.msra.mxu1 %v1049_v63 }
  0x94   : > { %v475_v24 = vpop.permute.xlu1 %474 }
  0xac   : > { %v443_v2 = vpop.xlane.xlu0 %442 }
  0xad   : > { %v445_v3 = vmul.f32 0.03125, %v443_v2 }
  0xaf   : > { %v446_v4 = vsub.f32 %v437_v0, %v445_v3 }
  0xb1   : > { %v447_v5 = vmul.f32 %v446_v4, %v446_v4 }
  0xb3   : > { %v448_v6 = vsel %vm440_vm0, %v447_v5, 0.0 }
  0xb4   : > { %449 = vadd.xlane.f32.xlu0 %v448_v6 }
 0x141   : > { %v450_v10 = vpop.xlane.xlu0 %449 }
 0x142   : > { %v451_v11 = vmul.f32 0.03125, %v450_v10 }
 0x144   : > { %v452_v12 = vadd.f32 1e-05, %v451_v11 }
 0x146   : > { %1050 = vrsqrt.f32 %v452_v12 }
 0x150   : > { %v1051_v13 = vpop.eup %1050 }
 0x151   : > { %v454_v15 = vmul.f32 %v1051_v13, %v446_v4 }
 0x153   : > { %v461_v17 = vmul.f32 %v909_v14, %v454_v15 }
 0x155   : > { %v468_v18 = vadd.f32 %v910_v16, %v461_v17 }
 0x157   : > { %v470_v19 = vpack.c.bf16 %v468_v18, %v468_v18 }
 0x159   : > { %v483_v20 = vsel %vm481_vm2, %v470_v19, 0 }
 0x15a   : > { %953 = vmatpush3.bf16.msra.mxu0 %v483_v20 }
 0x15b   : > { %958 = vmatprep.subr.bf16.mxu0 %v1122_v7 }
 0x15d   : > { %955 = vmatmul.mubr.msk.bf16.vlgmr.msra.gmra.mrb[0].mxu0 %vm477_vm3, %v469_v21 }
 0x15e   : > { %959 = vmatpush3.bf16.msra.mxu0 %v1038_v22  ;;  %962 = vmatprep.mubr.msk.bf16.mxu0 %vm1123_vm1, %v1122_v7 }
 0x15f   : > { %960 = vmatprep.subr.bf16.mxu0 %v1122_v7 }
 0x162   : > { %961 = vmatpush3.bf16.msra.mxu0 %v1039_v23 }
 0x163   : > { %966 = vmatprep.subr.bf16.mxu0 %v1122_v7 }
 0x230   : > { %v519_v25 = vpop.f32.mrb[0].mxu0 }
 0x231   : > { %v520_v26 = vadd.f32 %v519_v25, %v475_v24  ;;  %v956_v27 = vpop.f32.mrb[1].mxu0 }
 0x232   : > { %v522_v28 = vpop.f32.mrb[2].mxu0 }
 0x233   : > { %v525_v29 = vpack.c.bf16 %v520_v26, %v520_v26  ;;  %v957_v30 = vpop.f32.mrb[3].mxu0 }
 0x235   : > { %963 = vmatmul.mubr.msk.bf16.vlgmr.msra.gmra.mrb[4].mxu0 %vm440_vm0, %v525_v29 }
 0x236   : > { %970 = vmatprep.mubr.msk.bf16.mxu0 %vm1123_vm1, %v1122_v7  ;;  %967 = vmatpush3.bf16.msra.mxu0 %v1040_v44 }
 0x237   : > { %968 = vmatprep.subr.bf16.mxu0 %v1122_v7 }
 0x23a   : > { %969 = vmatpush3.bf16.msra.mxu0 %v1041_v45 }
 0x308   : > { %v586_v32 = vpop.f32.mrb[4].mxu0 }
 0x309   : > { %v587_v33 = vadd.f32 %v912_v31, %v586_v32  ;;  %v964_v34 = vpop.f32.mrb[5].mxu0  ;;  %v922_v32 = vld [vmem:[%s1404_s12] ss:$0 sm:$0xff] }
 0x30a   : > { %v589_v35 = vpop.f32.mrb[6].mxu0 }
 0x30b   : > { %v1286_v36 = vadd.f32 %v587_v33, %v437_v0  ;;  %v965_v37 = vpop.f32.mrb[7].mxu0  ;;  %v918_v0 = vld [vmem:[%s1402_s10] ss:$0 sm:$0xff] }
 0x30d   : > { %v595_v38 = vsel %vm440_vm0, %v1286_v36, 0.0 }
 0x30e   : > { %596 = vadd.xlane.f32.xlu1 %v595_v38 }
 0x39b   : > { %v597_v39 = vpop.xlane.xlu1 %596 }
 0x39c   : > { %v598_v40 = vmul.f32 0.03125, %v597_v39 }
 0x39e   : > { %v599_v41 = vsub.f32 %v1286_v36, %v598_v40 }
 0x3a0   : > { %v600_v42 = vmul.f32 %v599_v41, %v599_v41 }
 0x3a2   : > { %v601_v43 = vsel %vm440_vm0, %v600_v42, 0.0 }
 0x3a3   : > { %602 = vadd.xlane.f32.xlu0 %v601_v43 }
 0x430   : > { %v603_v46 = vpop.xlane.xlu0 %602 }
 0x431   : > { %v604_v47 = vmul.f32 0.03125, %v603_v46 }
 0x433   : > { %v605_v48 = vadd.f32 1e-05, %v604_v47 }
 0x435   : > { %1052 = vrsqrt.f32 %v605_v48 }
 0x43f   : > { %v1053_v49 = vpop.eup %1052 }
 0x440   : > { %v607_v51 = vmul.f32 %v1053_v49, %v599_v41 }
 0x442   : > { %v614_v53 = vmul.f32 %v916_v50, %v607_v51 }
 0x444   : > { %v621_v54 = vadd.f32 %v917_v52, %v614_v53 }
 0x446   : > { %v622_v55 = vpack.c.bf16 %v621_v54, %v621_v54 }
 0x448   : > { %971 = vmatmul.mubr.msk.bf16.vlgmr.msra.gmra.mrb[8].mxu0 %vm440_vm0, %v622_v55 }
 0x51b   : > { %v683_v1 = vpop.f32.mrb[8].mxu0 }
 0x51c   : > { %v684_v2 = vadd.f32 %v918_v0, %v683_v1  ;;  %v972_v3 = vpop.f32.mrb[9].mxu0 }
 0x51d   : > { %v686_v4 = vpop.f32.mrb[10].mxu0 }
 0x51e   : > { %v690_v5 = vmul.f32 0.70710677, %v684_v2  ;;  %v973_v6 = vpop.f32.mrb[11].mxu0  ;;  %v689_v28 = vmul.f32 0.5, %v684_v2 }
 0x520   : > { %v691_v8 = vand.u32 2147483647, %v690_v5  ;;  %vm711_vm4 = vcmp.ge.f32.partialorder %v690_v5, 0.0 }
 0x522   : > { %v692_v9 = vmul.f32 0.3275911, %v691_v8  ;;  %v705_v11 = vsub.f32 0.0, %v691_v8 }
 0x524   : > { %v693_v10 = vadd.f32 1.0, %v692_v9  ;;  %v706_v13 = vmul.f32 %v705_v11, %v691_v8 }
 0x526   : > { %1054 = vrcp.f32 %v693_v10  ;;  %v707_v15 = vmul.f32 1.442695, %v706_v13 }
 0x528   : > { %1056 = vpow2.f32 %v707_v15 }
 0x530   : > { %v1055_v12 = vpop.eup %1054 }
 0x531   : > { %v696_v14 = vmul.f32 1.0614054, %v1055_v12 }
 0x532   : > { %v1057_v23 = vpop.eup %1056 }
 0x533   : > { %v697_v7 = vadd.f32 -1.4531521, %v696_v14 }
 0x535   : > { %v698_v16 = vmul.f32 %v1055_v12, %v697_v7 }
 0x537   : > { %v699_v17 = vadd.f32 1.4214138, %v698_v16 }
 0x539   : > { %v700_v18 = vmul.f32 %v1055_v12, %v699_v17 }
 0x53b   : > { %v701_v19 = vadd.f32 -0.28449672, %v700_v18 }
 0x53d   : > { %v702_v20 = vmul.f32 %v1055_v12, %v701_v19 }
 0x53f   : > { %v703_v21 = vadd.f32 0.2548296, %v702_v20 }
 0x541   : > { %v704_v22 = vmul.f32 %v1055_v12, %v703_v21 }
 0x543   : > { %v709_v24 = vmul.f32 %v1057_v23, %v704_v22 }
 0x545   : > { %v710_v25 = vsub.f32 1.0, %v709_v24 }
 0x547   : > { %v712_v26 = vsub.f32 0.0, %v710_v25 }
 0x549   : > { %v713_v27 = vsel %vm711_vm4, %v710_v25, %v712_v26 }
 0x54a   : > { %v714_v29 = vadd.f32 1.0, %v713_v27 }
 0x54c   : > { %v715_v30 = vmul.f32 %v714_v29, %v689_v28 }
 0x54e   : > { %v716_v31 = vpack.c.bf16 %v715_v30, %v715_v30 }
 0x550   : > { %991 = vmatmul.mubr.bf16.vlgmr.msra.gmra.mrb[0].mxu1 %v716_v31 }
 0x623   : > { %v822_v33 = vpop.f32.mrb[0].mxu1 }
 0x624   : > { %v823_v34 = vadd.f32 %v922_v32, %v822_v33  ;;  %v992_v35 = vpop.f32.mrb[1].mxu1 }
 0x625   : > { %v825_v37 = vpop.f32.mrb[2].mxu1 }
 0x626   : > { %v828_v38 = vadd.f32 %v823_v34, %v1286_v36  ;;  %v993_v39 = vpop.f32.mrb[3].mxu1 }
 0x628   : > { %829 = vst.msk [vmem:[%s431_s22] sm:$0xff] %vm440_vm0, %v828_v38 }
 0x629   : > { %1071 = shalt.err (!%p1068_p3)
}
 0x62a   : > { %s1072_s0 = scalar_lea.hbm %s1349_s1, 128  ;;  %s1076_s22 = scalar_lea.hbm %s1405_s13, 256 }
 0x62b   : > { %p1073_p4 = scmp.ne.s32.totalorder %s1349_s1, %s1072_s0  ;;  %p1077_p9 = scmp.lt.u32.totalorder %s1349_s1, %s1405_s13 }
 0x62c   : > { %p1078_p10 = scmp.lt.u32.totalorder %s1076_s22, %s1072_s0  ;;  %p1080_p12 = scmp.lt.u32.totalorder %s1072_s0, %s1349_s1 }
 0x62d   : > { %p1074_p7 = pnand %p1073_p4, %p1234_p5 }
 0x62e   : > { %p1079_p11 = por %p1078_p10, %p1077_p9 }
 0x62f   : > { %p1075_p8 = pneg %p1074_p7 }
 0x630   : > { %p1081_p13 = por %p1080_p12, %p1079_p11 }
 0x632   : > { %p1082_p0 = pnand %p1081_p13, %p1075_p8 }
 0x634   : > { %1085 = shalt.err (!%p1082_p0)
}
 0x635   : > { %994 = dma.vmem_to_hbm [thread:$0]  (%p1234_p5), %s1351_s23, 128, %s1349_s1, %s831_s29  }
 0x636 PF: > { %p1000_p1 = scmp.ge.s32.totalorder %s1120_s28, 2  ;;  %s856_s2 = sand.u32 1, %s1108_s25  }
 0x637   : > { %s857_s15 = scalar_lea.sflag [#allocation3], %s856_s2 }
 0x638   : > { %p997_p2 = pnand %p1000_p1, %p1238_p6 }
 0x63a   : > { %1103 = dma.done.wait (!%p997_p2), %s857_s15, 128  }
 0x63b   : > { %1105 = vsyncadd (!%p997_p2), %s857_s15, 4294967168  ;;  %p23_p3 = scmp.ge.s32.totalorder %s1221_s14, 4   ;;  %s1414_s25 = smov %s1112_s26 }
 0x63c   : > { %s1415_s26 = smov %s1116_s27  ;;  %s1416_s27 = smov %s1232_s17 }
 0x63d   : > { %s1417_s28 = smov %s1221_s14  ;;  %25 = sbr.rel (!%p23_p3) target bundleno = 7 (0x7), region = 107 }
 0x644   :  { %862 = vsyncpa [#allocation3], 1 }
 0x645   :  { %864 = vsyncpa [#allocation3 + $0x1], 1 }

</bundles_post_ra>
